<compile_context>
chip_gen: v7x
topology: tpu7x:2x2x1
jax: 0.10.0
libtpu: 0.0.40
codegen_flags: <defaults>
</compile_context>

<pallas_src>
import jax
import jax.numpy as jnp
from jax.experimental import pallas as pl
from jax.experimental.pallas import tpu as pltpu


_ACTIVATIONS = {
    "ReLU": lambda x: jnp.maximum(x, 0.0),
    "Tanh": jnp.tanh,
    "Sigmoid": jax.nn.sigmoid,
    "GELU": jax.nn.gelu,
    "ELU": jax.nn.elu,
    "SiLU": jax.nn.silu,
    "LeakyReLU": lambda x: jnp.where(x >= 0, x, 0.01 * x),
}


def _make_decoder_kernel(num_hidden, use_batch_norm, activation):
    act = _ACTIVATIONS[activation]

    def kernel(*refs):
        # refs: x, [per hidden layer: (bn_scale, bn_shift)?, w, b], w_out, b_out, out
        idx = 0
        x = refs[idx][...].astype(jnp.float32)
        idx += 1
        for _ in range(num_hidden):
            if use_batch_norm:
                scale = refs[idx][...]
                shift = refs[idx + 1][...]
                idx += 2
                x = x * scale + shift          # eval BatchNorm1d folded to one FMA
            # Dropout(0.1): identity in eval mode.
            w = refs[idx][...]
            b = refs[idx + 1][...]
            idx += 2
            x = jnp.dot(x, w, preferred_element_type=jnp.float32) + b  # MXU
            x = act(x)
        w_out = refs[idx][...]
        b_out = refs[idx + 1][...]
        out_ref = refs[idx + 2]
        # trans - decay fused into a single matmul (weights pre-subtracted).
        y = jnp.dot(x, w_out, preferred_element_type=jnp.float32) + b_out
        out_ref[...] = y.astype(out_ref.dtype)

    return kernel


def div_decoder_forward(x, hidden_params, trans_w, trans_b, decay_w, decay_b,
                        *, use_batch_norm=True, layer_activation="ReLU",
                        bn_eps=1e-5, max_tile_b=256):
    """Forward pass of _DivDecoder (eval mode).

    hidden_params: list of dicts per hidden layer with PyTorch-convention params:
        'weight' (out, in), 'bias' (out,), and (if use_batch_norm)
        'bn_gamma', 'bn_beta', 'bn_mean', 'bn_var' (each (in,)).
    trans_w / decay_w: (output_f, hidden_f[-1]); trans_b / decay_b: (output_f,)
    """
    B, latent_f = x.shape
    output_f = trans_w.shape[0]

    # ---- one-time wrapper-side parameter prep (no per-tile cost) ----
    inputs = [x]
    for p in hidden_params:
        if use_batch_norm:
            scale = (p["bn_gamma"] / jnp.sqrt(p["bn_var"] + bn_eps)).astype(jnp.float32)
            shift = (p["bn_beta"] - p["bn_mean"] * scale).astype(jnp.float32)
            inputs.append(scale.reshape(1, -1))
            inputs.append(shift.reshape(1, -1))
        inputs.append(p["weight"].T.astype(jnp.float32))        # (in, out): no in-kernel transpose
        inputs.append(p["bias"].reshape(1, -1).astype(jnp.float32))
    w_out = (trans_w - decay_w).T.astype(jnp.float32)           # (hidden[-1], output_f)
    b_out = (trans_b - decay_b).reshape(1, -1).astype(jnp.float32)
    inputs += [w_out, b_out]

    # ---- batch tiling (second-to-last dim must be a multiple of 8 or == B) ----
    if B <= max_tile_b:
        tile_b = B
    else:
        tile_b = (max_tile_b - (max_tile_b % 8)) or 8
    grid = (pl.cdiv(B, tile_b),)

    in_specs = [pl.BlockSpec((tile_b, latent_f), lambda i: (i, 0))]
    for a in inputs[1:]:
        # small parameter blocks: resident across the whole grid
        in_specs.append(pl.BlockSpec(a.shape, lambda i: (0, 0)))
    out_specs = pl.BlockSpec((tile_b, output_f), lambda i: (i, 0))

    kernel = _make_decoder_kernel(len(hidden_params), use_batch_norm, layer_activation)

    return pl.pallas_call(
        kernel,
        out_shape=jax.ShapeDtypeStruct((B, output_f), x.dtype),
        grid=grid,
        in_specs=in_specs,
        out_specs=out_specs,
        compiler_params=pltpu.CompilerParams(
            dimension_semantics=("parallel",),
            vmem_limit_bytes=32 * 1024 * 1024,
        ),
    )(*inputs)


def _reference(x, hidden_params, trans_w, trans_b, decay_w, decay_b,
               use_batch_norm, activation, bn_eps=1e-5):
    act = _ACTIVATIONS[activation]
    h = x
    for p in hidden_params:
        if use_batch_norm:
            h = (h - p["bn_mean"]) / jnp.sqrt(p["bn_var"] + bn_eps) * p["bn_gamma"] + p["bn_beta"]
        # Dropout eval-mode = identity
        h = h @ p["weight"].T + p["bias"]
        h = act(h)
    trans = h @ trans_w.T + trans_b
    decay = h @ decay_w.T + decay_b
    return trans - decay


if __name__ == "__main__":
    key = jax.random.PRNGKey(0)
    keys = iter(jax.random.split(key, 64))

    # Small shapes consistent with the module: latent -> hidden list -> output
    batch, latent_f, output_f = 16, 8, 16
    hidden_f = [32, 64]
    use_batch_norm = True
    activation = "ReLU"

    neurons = [latent_f] + hidden_f

    x = jax.random.normal(next(keys), (batch, latent_f), dtype=jnp.float32)

    hidden_params = []
    for i in range(len(neurons) - 1):
        fan_in, fan_out = neurons[i], neurons[i + 1]
        p = {
            "weight": 0.2 * jax.random.normal(next(keys), (fan_out, fan_in), jnp.float32),
            "bias": 0.1 * jax.random.normal(next(keys), (fan_out,), jnp.float32),
        }
        if use_batch_norm:
            p["bn_gamma"] = 1.0 + 0.1 * jax.random.normal(next(keys), (fan_in,), jnp.float32)
            p["bn_beta"] = 0.1 * jax.random.normal(next(keys), (fan_in,), jnp.float32)
            p["bn_mean"] = 0.1 * jax.random.normal(next(keys), (fan_in,), jnp.float32)
            p["bn_var"] = jnp.abs(1.0 + 0.1 * jax.random.normal(next(keys), (fan_in,), jnp.float32))
        hidden_params.append(p)

    trans_w = 0.2 * jax.random.normal(next(keys), (output_f, neurons[-1]), jnp.float32)
    trans_b = 0.1 * jax.random.normal(next(keys), (output_f,), jnp.float32)
    decay_w = 0.2 * jax.random.normal(next(keys), (output_f, neurons[-1]), jnp.float32)
    decay_b = 0.1 * jax.random.normal(next(keys), (output_f,), jnp.float32)

    # Use a small batch tile so the grid (2 tiles) is actually exercised.
    out = div_decoder_forward(
        x, hidden_params, trans_w, trans_b, decay_w, decay_b,
        use_batch_norm=use_batch_norm, layer_activation=activation, max_tile_b=8)
    out = jax.block_until_ready(out)

    ref = _reference(x, hidden_params, trans_w, trans_b, decay_w, decay_b,
                     use_batch_norm, activation)

    assert out.shape == (batch, output_f), out.shape
    assert jnp.allclose(out, ref, rtol=1e-5, atol=1e-5), float(jnp.max(jnp.abs(out - ref)))

    print("KERNEL_OK")
</pallas_src>

<mosaic_0001>
module attributes {stable_mosaic.version = 11 : i64} {
  func.func @kernel(%arg0: i32, %arg1: memref<8x8xf32, #tpu.memory_space<vmem>>, %arg2: memref<1x8xf32, #tpu.memory_space<vmem>>, %arg3: memref<1x8xf32, #tpu.memory_space<vmem>>, %arg4: memref<8x32xf32, #tpu.memory_space<vmem>>, %arg5: memref<1x32xf32, #tpu.memory_space<vmem>>, %arg6: memref<1x32xf32, #tpu.memory_space<vmem>>, %arg7: memref<1x32xf32, #tpu.memory_space<vmem>>, %arg8: memref<32x64xf32, #tpu.memory_space<vmem>>, %arg9: memref<1x64xf32, #tpu.memory_space<vmem>>, %arg10: memref<64x16xf32, #tpu.memory_space<vmem>>, %arg11: memref<1x16xf32, #tpu.memory_space<vmem>>, %arg12: memref<8x16xf32, #tpu.memory_space<vmem>>) attributes {dimension_semantics = [#tpu.dimension_semantics<parallel>], iteration_bounds = array<i64: 2>, scalar_prefetch = 0 : i64, scratch_operands = 0 : i64, tpu.core_type = #tpu.core_type<tc>, window_params = [{transform_indices = @transform_0, window_bounds = array<i64: 8, 8>}, {pipeline_mode = #tpu.pipeline_mode<synchronous>, transform_indices = @transform_1, window_bounds = array<i64: 1, 8>}, {pipeline_mode = #tpu.pipeline_mode<synchronous>, transform_indices = @transform_2, window_bounds = array<i64: 1, 8>}, {pipeline_mode = #tpu.pipeline_mode<synchronous>, transform_indices = @transform_3, window_bounds = array<i64: 8, 32>}, {pipeline_mode = #tpu.pipeline_mode<synchronous>, transform_indices = @transform_4, window_bounds = array<i64: 1, 32>}, {pipeline_mode = #tpu.pipeline_mode<synchronous>, transform_indices = @transform_5, window_bounds = array<i64: 1, 32>}, {pipeline_mode = #tpu.pipeline_mode<synchronous>, transform_indices = @transform_6, window_bounds = array<i64: 1, 32>}, {pipeline_mode = #tpu.pipeline_mode<synchronous>, transform_indices = @transform_7, window_bounds = array<i64: 32, 64>}, {pipeline_mode = #tpu.pipeline_mode<synchronous>, transform_indices = @transform_8, window_bounds = array<i64: 1, 64>}, {pipeline_mode = #tpu.pipeline_mode<synchronous>, transform_indices = @transform_9, window_bounds = array<i64: 64, 16>}, {pipeline_mode = #tpu.pipeline_mode<synchronous>, transform_indices = @transform_10, window_bounds = array<i64: 1, 16>}, {transform_indices = @transform_11, window_bounds = array<i64: 8, 16>}]} {
    %c0 = arith.constant 0 : index
    %c0_0 = arith.constant 0 : index
    %0 = vector.load %arg1[%c0, %c0_0] : memref<8x8xf32, #tpu.memory_space<vmem>>, vector<8x8xf32>
    %c0_1 = arith.constant 0 : index
    %c0_2 = arith.constant 0 : index
    %1 = vector.load %arg2[%c0_1, %c0_2] : memref<1x8xf32, #tpu.memory_space<vmem>>, vector<1x8xf32>
    %c0_3 = arith.constant 0 : index
    %c0_4 = arith.constant 0 : index
    %2 = vector.load %arg3[%c0_3, %c0_4] : memref<1x8xf32, #tpu.memory_space<vmem>>, vector<1x8xf32>
    %3 = vector.broadcast %1 : vector<1x8xf32> to vector<8x8xf32>
    %4 = arith.mulf %0, %3 : vector<8x8xf32>
    %5 = vector.broadcast %2 : vector<1x8xf32> to vector<8x8xf32>
    %6 = arith.addf %4, %5 : vector<8x8xf32>
    %c0_5 = arith.constant 0 : index
    %c0_6 = arith.constant 0 : index
    %7 = vector.load %arg4[%c0_5, %c0_6] : memref<8x32xf32, #tpu.memory_space<vmem>>, vector<8x32xf32>
    %c0_7 = arith.constant 0 : index
    %c0_8 = arith.constant 0 : index
    %8 = vector.load %arg5[%c0_7, %c0_8] : memref<1x32xf32, #tpu.memory_space<vmem>>, vector<1x32xf32>
    %cst = arith.constant dense<0.000000e+00> : vector<8x32xf32>
    %9 = tpu.matmul %6, %7, %cst {dimension_numbers = #tpu.dot_dimension_numbers<[1], [0], [0], [1], [0, 0, 1, 1], [], []>} : vector<8x8xf32>, vector<8x32xf32>, vector<8x32xf32> -> vector<8x32xf32>
    %10 = vector.broadcast %8 : vector<1x32xf32> to vector<8x32xf32>
    %11 = arith.addf %9, %10 : vector<8x32xf32>
    %cst_9 = arith.constant 0.000000e+00 : f32
    %12 = vector.broadcast %cst_9 : f32 to vector<8x32xf32>
    %13 = arith.maximumf %11, %12 : vector<8x32xf32>
    %c0_10 = arith.constant 0 : index
    %c0_11 = arith.constant 0 : index
    %14 = vector.load %arg6[%c0_10, %c0_11] : memref<1x32xf32, #tpu.memory_space<vmem>>, vector<1x32xf32>
    %c0_12 = arith.constant 0 : index
    %c0_13 = arith.constant 0 : index
    %15 = vector.load %arg7[%c0_12, %c0_13] : memref<1x32xf32, #tpu.memory_space<vmem>>, vector<1x32xf32>
    %16 = vector.broadcast %14 : vector<1x32xf32> to vector<8x32xf32>
    %17 = arith.mulf %13, %16 : vector<8x32xf32>
    %18 = vector.broadcast %15 : vector<1x32xf32> to vector<8x32xf32>
    %19 = arith.addf %17, %18 : vector<8x32xf32>
    %c0_14 = arith.constant 0 : index
    %c0_15 = arith.constant 0 : index
    %20 = vector.load %arg8[%c0_14, %c0_15] : memref<32x64xf32, #tpu.memory_space<vmem>>, vector<32x64xf32>
    %c0_16 = arith.constant 0 : index
    %c0_17 = arith.constant 0 : index
    %21 = vector.load %arg9[%c0_16, %c0_17] : memref<1x64xf32, #tpu.memory_space<vmem>>, vector<1x64xf32>
    %cst_18 = arith.constant dense<0.000000e+00> : vector<8x64xf32>
    %22 = tpu.matmul %19, %20, %cst_18 {dimension_numbers = #tpu.dot_dimension_numbers<[1], [0], [0], [1], [0, 0, 1, 1], [], []>} : vector<8x32xf32>, vector<32x64xf32>, vector<8x64xf32> -> vector<8x64xf32>
    %23 = vector.broadcast %21 : vector<1x64xf32> to vector<8x64xf32>
    %24 = arith.addf %22, %23 : vector<8x64xf32>
    %cst_19 = arith.constant 0.000000e+00 : f32
    %25 = vector.broadcast %cst_19 : f32 to vector<8x64xf32>
    %26 = arith.maximumf %24, %25 : vector<8x64xf32>
    %c0_20 = arith.constant 0 : index
    %c0_21 = arith.constant 0 : index
    %27 = vector.load %arg10[%c0_20, %c0_21] : memref<64x16xf32, #tpu.memory_space<vmem>>, vector<64x16xf32>
    %c0_22 = arith.constant 0 : index
    %c0_23 = arith.constant 0 : index
    %28 = vector.load %arg11[%c0_22, %c0_23] : memref<1x16xf32, #tpu.memory_space<vmem>>, vector<1x16xf32>
    %cst_24 = arith.constant dense<0.000000e+00> : vector<8x16xf32>
    %29 = tpu.matmul %26, %27, %cst_24 {dimension_numbers = #tpu.dot_dimension_numbers<[1], [0], [0], [1], [0, 0, 1, 1], [], []>} : vector<8x64xf32>, vector<64x16xf32>, vector<8x16xf32> -> vector<8x16xf32>
    %30 = vector.broadcast %28 : vector<1x16xf32> to vector<8x16xf32>
    %31 = arith.addf %29, %30 : vector<8x16xf32>
    %c0_25 = arith.constant 0 : index
    %c0_26 = arith.constant 0 : index
    %32 = vector.load %arg12[%c0_25, %c0_26] : memref<8x16xf32, #tpu.memory_space<vmem>>, vector<8x16xf32>
    tpu.vector_store %arg12[%c0_25, %c0_26], %31 {strides = array<i32>} : memref<8x16xf32, #tpu.memory_space<vmem>>, vector<8x16xf32>,
    return
  }
  func.func @transform_0(%arg0: i32) -> (i32, i32) {
    %c0_i32 = arith.constant 0 : i32
    %c0_i32_0 = arith.constant 0 : i32
    return %arg0, %c0_i32 : i32, i32
  }
  func.func @transform_1(%arg0: i32) -> (i32, i32) {
    %c0_i32 = arith.constant 0 : i32
    %c0_i32_0 = arith.constant 0 : i32
    %c0_i32_1 = arith.constant 0 : i32
    return %c0_i32, %c0_i32_0 : i32, i32
  }
  func.func @transform_2(%arg0: i32) -> (i32, i32) {
    %c0_i32 = arith.constant 0 : i32
    %c0_i32_0 = arith.constant 0 : i32
    %c0_i32_1 = arith.constant 0 : i32
    return %c0_i32, %c0_i32_0 : i32, i32
  }
  func.func @transform_3(%arg0: i32) -> (i32, i32) {
    %c0_i32 = arith.constant 0 : i32
    %c0_i32_0 = arith.constant 0 : i32
    %c0_i32_1 = arith.constant 0 : i32
    return %c0_i32, %c0_i32_0 : i32, i32
  }
  func.func @transform_4(%arg0: i32) -> (i32, i32) {
    %c0_i32 = arith.constant 0 : i32
    %c0_i32_0 = arith.constant 0 : i32
    %c0_i32_1 = arith.constant 0 : i32
    return %c0_i32, %c0_i32_0 : i32, i32
  }
  func.func @transform_5(%arg0: i32) -> (i32, i32) {
    %c0_i32 = arith.constant 0 : i32
    %c0_i32_0 = arith.constant 0 : i32
    %c0_i32_1 = arith.constant 0 : i32
    return %c0_i32, %c0_i32_0 : i32, i32
  }
  func.func @transform_6(%arg0: i32) -> (i32, i32) {
    %c0_i32 = arith.constant 0 : i32
    %c0_i32_0 = arith.constant 0 : i32
    %c0_i32_1 = arith.constant 0 : i32
    return %c0_i32, %c0_i32_0 : i32, i32
  }
  func.func @transform_7(%arg0: i32) -> (i32, i32) {
    %c0_i32 = arith.constant 0 : i32
    %c0_i32_0 = arith.constant 0 : i32
    %c0_i32_1 = arith.constant 0 : i32
    return %c0_i32, %c0_i32_0 : i32, i32
  }
  func.func @transform_8(%arg0: i32) -> (i32, i32) {
    %c0_i32 = arith.constant 0 : i32
    %c0_i32_0 = arith.constant 0 : i32
    %c0_i32_1 = arith.constant 0 : i32
    return %c0_i32, %c0_i32_0 : i32, i32
  }
  func.func @transform_9(%arg0: i32) -> (i32, i32) {
    %c0_i32 = arith.constant 0 : i32
    %c0_i32_0 = arith.constant 0 : i32
    %c0_i32_1 = arith.constant 0 : i32
    return %c0_i32, %c0_i32_0 : i32, i32
  }
  func.func @transform_10(%arg0: i32) -> (i32, i32) {
    %c0_i32 = arith.constant 0 : i32
    %c0_i32_0 = arith.constant 0 : i32
    %c0_i32_1 = arith.constant 0 : i32
    return %c0_i32, %c0_i32_0 : i32, i32
  }
  func.func @transform_11(%arg0: i32) -> (i32, i32) {
    %c0_i32 = arith.constant 0 : i32
    %c0_i32_0 = arith.constant 0 : i32
    return %arg0, %c0_i32 : i32, i32
  }
}

</mosaic_0001>

<bundles_post_ra>
// kernel: tpu_custom_call.1
= control target key start
LH: loop header
LB: loop body
LE: loop exit
PB: predicated region body
PF: predicated region fallthrough
CT: control target
= control target key end

     0   :  { %s1167_s0 = inlined_call_operand.vmem [shape: f32[16,8], index: 0, kind: input, shape index: {}]   ;;  %s1168_s1 = inlined_call_operand.vmem [shape: f32[1,8], index: 1, kind: input, shape index: {}]   ;;  %s1169_s2 = inlined_call_operand.vmem [shape: f32[1,8], index: 2, kind: input, shape index: {}]   ;;  %s1170_s3 = inlined_call_operand.vmem [shape: f32[8,32], index: 3, kind: input, shape index: {}]   ;;  %s1171_s4 = inlined_call_operand.vmem [shape: f32[1,32], index: 4, kind: input, shape index: {}]   ;;  %s1172_s5 = inlined_call_operand.vmem [shape: f32[1,32], index: 5, kind: input, shape index: {}]   ;;  %s1173_s6 = inlined_call_operand.vmem [shape: f32[1,32], index: 6, kind: input, shape index: {}]   ;;  %s1174_s7 = inlined_call_operand.vmem [shape: f32[32,64], index: 7, kind: input, shape index: {}]   ;;  %s1175_s8 = inlined_call_operand.vmem [shape: f32[1,64], index: 8, kind: input, shape index: {}]   ;;  %s1176_s9 = inlined_call_operand.vmem [shape: f32[64,16], index: 9, kind: input, shape index: {}]   ;;  %s1177_s10 = inlined_call_operand.vmem [shape: f32[1,16], index: 10, kind: input, shape index: {}]   ;;  %s1178_s11 = inlined_call_operand.hbm [shape: f32[16,16], index: 11, kind: output, shape index: {}]  }
   0x1   :  { %1179 = sst [smem:[#allocation5_spill]] %s1167_s0 }
   0x2   :  { %16 = vsyncpa [#allocation3], 0 }
   0x3   :  { %18 = vsyncpa [#allocation3 + $0x1], 0  ;;  %s1007_s17 = smov 0   ;;  %s1009_s18 = smov 0  }
   0x4   :  { %s1011_s19 = smov 0   ;;  %s1013_s20 = smov 0  }
   0x5 LB: > { %s1028_s21 = sadd.s32 4294967295, %s941_s20   ;;  %s748_s22 = sadd.s32 4294967294, %s941_s20   ;;  %s941_s20 = sphi %s1013_s20, %s1186_s20   ;;  %s937_s19 = sphi %s1011_s19, %s1185_s19   ;;  %s933_s18 = sphi %s1009_s18, %s1184_s18   ;;  %s929_s17 = sphi %s1007_s17, %s1183_s17  }
   0x6   : > { %s1032_s23 = sadd.s32 1, %s941_s20   ;;  %s267_s24 = sadd.s32 1, %s937_s19 }
   0x7   : > { %s264_s25 = ssub.s32 %s941_s20, %s1032_s23  ;;  %p277_p0 = scmp.ne.s32.totalorder %s937_s19, %s933_s18 }
   0x8   : > { %p265_p1 = scmp.eq.s32.totalorder %s264_s25, 0  ;;  %p278_p2 = scmp.eq.s32.totalorder %s1028_s21, 1 }
   0x9   : > { %p283_p3 = scmp.ne.s32.totalorder %s933_s18, %s929_s17  ;;  %p284_p4 = scmp.eq.s32.totalorder %s748_s22, 1 }
   0xa   : > { %s1043_s26 = scalar_select %p265_p1, %s937_s19, %s267_s24  }
   0xb   : > { %p1045_p5 = por %p278_p2, %p277_p0  ;;  %p1049_p6 = por %p284_p4, %p283_p3 }
   0xc   : > { %p751_p7 = scmp.ge.s32.totalorder %s941_s20, 1  ;;  %p339_p8 = scmp.lt.s32.totalorder %s941_s20, 3 }
   0xe   : > { %p340_p9 = pnand %p751_p7, %p339_p8 }
   0xf   : > { %v399_v0 = vld [vmem:[%s1170_s3] sm:$0xff] (!%p340_p9)  ;;  %p378_p10 = scmp.lt.s32.totalorder (!%p340_p9), %s1028_s21, 1  ;;  %v943_v1 = vmov (!%p340_p9), 0.0   ;;  %vm944_vm0 = vmmov (!%p340_p9), 0   ;;  %s1182_s0 = sld [smem:[#allocation5_spill]] (!%p340_p9)  ;;  %vm407_vm1 = vcmask (!%p340_p9), 64512  }
  0x10   : > { %343 = sbr.rel (%p340_p9) target bundleno = 696 (0x2b8), region = 64  ;;  %784 = vmatprep.subr.mxu1 (!%p340_p9), %v943_v1  ;;  %786 = vmatprep.mubr.msk.f32.mxu1 (!%p340_p9), %vm944_vm0, %v943_v1  ;;  %v754_v2 = vld [vmem:[%s1168_s1] ss:$0 sm:$0xff] (!%p340_p9)  ;;  %v499_v8 = vld [vmem:[%s1174_s7 + $0x8] sm:$0xff] (!%p340_p9)  ;;  %v945_v10 = vmov (!%p340_p9), 0.0|0.0   ;;  %v500_v11 = vld [vmem:[%s1174_s7 + $0x10] sm:$0xff] (!%p340_p9) }
  0x11   : > { %785 = vmatpush3.msra.mxu1 (!%p340_p9), %v399_v0  ;;  %816 = vmatprep.mubr.msk.f32.mxu0 (!%p340_p9), %vm944_vm0, %v943_v1  ;;  %v755_v4 = vld [vmem:[%s1169_s2] ss:$0 sm:$0xff] (!%p340_p9)  ;;  %v501_v12 = vld [vmem:[%s1174_s7 + $0x18] sm:$0xff] (!%p340_p9)  ;;  %v585_v15 = vld [vmem:[%s1176_s9 + $0x8] sm:$0xff] (!%p340_p9)  ;;  %vm509_vm2 = vcmask (!%p340_p9), 261120   ;;  %vm599_vm3 = vcmask (!%p340_p9), 523264  }
  0x12   : > { %v498_v7 = vld [vmem:[%s1174_s7] sm:$0xff] (!%p340_p9)  ;;  %819 = vmatprep.subr.bf16.mxu1 (!%p340_p9), %v945_v10  ;;  %825 = vmatprep.subr.bf16.mxu0 (!%p340_p9), %v945_v10  ;;  %v823_v13 = vpack.c.bf16 (!%p340_p9), %v501_v12, %v500_v11  ;;  %v586_v16 = vld [vmem:[%s1176_s9 + $0x10] sm:$0xff] (!%p340_p9)  ;;  %v587_v18 = vld [vmem:[%s1176_s9 + $0x18] sm:$0xff] (!%p340_p9)  ;;  %s375_s14 = sand.u32 (!%p340_p9), 1, %s933_s18   ;;  %s765_s22 = sshll.u32 (!%p340_p9), %s1028_s21, 7  ;;  %vm673_vm4 = vcmask (!%p340_p9), 130048  }
  0x13   : > { %v820_v9 = vpack.c.bf16 (!%p340_p9), %v499_v8, %v498_v7  ;;  %v584_v14 = vld [vmem:[%s1176_s9] sm:$0xff] (!%p340_p9)  ;;  %v829_v19 = vpack.c.bf16 (!%p340_p9), %v587_v18, %v586_v16  ;;  %v589_v21 = vld [vmem:[%s1176_s9 + $0x28] sm:$0xff] (!%p340_p9)  ;;  %v590_v32 = vld [vmem:[%s1176_s9 + $0x30] sm:$0xff] (!%p340_p9)  ;;  %s752_s15 = sshll.u32 (!%p340_p9), %s375_s14, 3 }
  0x14   : > { %v826_v17 = vpack.c.bf16 (!%p340_p9), %v585_v15, %v584_v14  ;;  %v588_v20 = vld [vmem:[%s1176_s9 + $0x20] sm:$0xff] (!%p340_p9)  ;;  %v591_v33 = vld [vmem:[%s1176_s9 + $0x38] sm:$0xff] (!%p340_p9) }
  0x15   : > { %v832_v22 = vpack.c.bf16 (!%p340_p9), %v589_v21, %v588_v20  ;;  %v756_v23 = vld [vmem:[%s1171_s4] ss:$0 sm:$0xff] (!%p340_p9)  ;;  %v835_v34 = vpack.c.bf16 (!%p340_p9), %v591_v33, %v590_v32 }
  0x16   : > { %827 = vmatpush3.bf16.msra.mxu0 (!%p340_p9), %v826_v17  ;;  %v758_v27 = vld [vmem:[%s1172_s5] ss:$0 sm:$0xff] (!%p340_p9) }
  0x17   : > { %s379_s12 = scalar_select %p378_p10, %s1028_s21, 1  ;;  %828 = vmatprep.subr.bf16.mxu0 %v945_v10  ;;  %v759_v29 = vld [vmem:[%s1173_s6] ss:$0 sm:$0xff] }
  0x18   : > { %v760_v35 = vld [vmem:[%s1175_s8] ss:$0 sm:$0xff]  ;;  %s946_s21 = smov [#allocation2]  }
  0x19   : > { %s753_s13 = sshll.u32 %s379_s12, 3  ;;  %v762_v40 = vld [vmem:[%s1177_s10] ss:$0 sm:$0xff]  ;;  %s1125_s12 = scalar_lea.hbm %s1178_s11, %s765_s22 }
  0x1a   : > { %s381_s24 = scalar_lea.vmem %s1182_s0, %s753_s13  ;;  %830 = vmatpush3.bf16.msra.mxu0 %v829_v19  ;;  %s676_s13 = scalar_lea.sflag [#allocation3], %s375_s14 }
  0x1b   : > { %v382_v3 = vld [vmem:[%s381_s24] sm:$0xff]  ;;  %831 = vmatprep.subr.bf16.mxu0 %v945_v10  ;;  %s377_s24 = scalar_lea.vmem [#allocation2], %s752_s15  ;;  %s883_s15 = sshll.u32 %s946_s21, 4  ;;  %s884_s15 = int_to_ptr.vmem [resolvable:$false] %s883_s15 }
  0x1c   : > { %v391_v5 = vmul.f32 %v754_v2, %v382_v3  ;;  %s689_s25 = sshll.u32 %s377_s24, 4  ;;  %s885_s0 = scalar_lea.vmem %s884_s15, 256  ;;  %s1127_s25 = int_to_ptr.vmem [resolvable:$true] %s689_s25 }
  0x1d   : > { %s879_s16 = scalar_lea.vmem %s1127_s25, 128  ;;  %p886_p0 = scmp.lt.s32.totalorder %s1127_s25, %s884_s15 }
  0x1e   : > { %v398_v6 = vadd.f32 %v755_v4, %v391_v5  ;;  %833 = vmatpush3.bf16.msra.mxu0 %v832_v22  ;;  %p880_p11 = scmp.ne.s32.totalorder %s1127_s25, %s879_s16  ;;  %p887_p1 = scmp.lt.s32.totalorder %s885_s0, %s879_s16 }
  0x1f   : > { %834 = vmatprep.subr.bf16.mxu0 %v945_v10 }
  0x20   : > { %787 = vmatmul.mubr.msk.f32.vlgmr.msra.gmra.mrb[0].mxu1 %vm407_vm1, %v398_v6  ;;  %p881_p12 = pnand %p880_p11, %p1045_p5  ;;  %p888_p2 = por %p887_p1, %p886_p0 }
  0x21   : > { %797 = vmatprep.mubr.msk.f32.mxu1 %vm944_vm0, %v943_v1  ;;  %821 = vmatpush3.bf16.msra.mxu1 %v820_v9 }
  0x22   : > { %822 = vmatprep.subr.bf16.mxu1 %v945_v10  ;;  %836 = vmatpush3.bf16.msra.mxu0 %v835_v34  ;;  %p882_p13 = pneg %p881_p12 }
  0x24   : > { %p889_p3 = pnand %p888_p2, %p882_p13 }
  0x25   : > { %824 = vmatpush3.bf16.msra.mxu1 %v823_v13 }
  0xf3   : > { %v477_v24 = vpop.f32.mrb[0].mxu1 }
  0xf4   : > { %v478_v25 = vadd.f32 %v756_v23, %v477_v24  ;;  %v788_v26 = vpop.f32.mrb[1].mxu1 }
  0xf6   : > { %v481_v28 = vmax.f32 %v478_v25, 0.0 }
  0xf8   : > { %v490_v30 = vmul.f32 %v758_v27, %v481_v28 }
  0xfa   : > { %v497_v31 = vadd.f32 %v759_v29, %v490_v30 }
  0xfc   : > { %798 = vmatmul.mubr.msk.f32.vlgmr.msra.gmra.mrb[2].mxu1 %vm509_vm2, %v497_v31 }
 0x1cf   : > { %v579_v36 = vpop.f32.mrb[2].mxu1 }
 0x1d0   : > { %v580_v37 = vadd.f32 %v760_v35, %v579_v36  ;;  %v799_v38 = vpop.f32.mrb[3].mxu1 }
 0x1d2   : > { %v583_v39 = vmax.f32 %v580_v37, 0.0 }
 0x1d4   : > { %817 = vmatmul.mubr.msk.f32.vlgmr.msra.gmra.mrb[0].mxu0 %vm599_vm3, %v583_v39 }
 0x2a7   : > { %v669_v41 = vpop.f32.mrb[0].mxu0 }
 0x2a8   : > { %v670_v42 = vadd.f32 %v762_v40, %v669_v41  ;;  %v818_v43 = vpop.f32.mrb[1].mxu0 }
 0x2aa   : > { %674 = vst.msk [vmem:[%s377_s24] sm:$0xff] %vm673_vm4, %v670_v42 }
 0x2ab   : > { %892 = shalt.err (!%p889_p3)
}
 0x2ac   : > { %s893_s14 = scalar_lea.hbm %s1125_s12, 128  ;;  %s897_s29 = scalar_lea.hbm %s1178_s11, 256 }
 0x2ad   : > { %p894_p4 = scmp.ne.s32.totalorder %s1125_s12, %s893_s14  ;;  %p898_p9 = scmp.lt.u32.totalorder %s1125_s12, %s1178_s11 }
 0x2ae   : > { %p899_p10 = scmp.lt.u32.totalorder %s897_s29, %s893_s14  ;;  %p901_p12 = scmp.lt.u32.totalorder %s893_s14, %s1125_s12 }
 0x2af   : > { %p895_p7 = pnand %p894_p4, %p1045_p5 }
 0x2b0   : > { %p900_p11 = por %p899_p10, %p898_p9 }
 0x2b1   : > { %p896_p8 = pneg %p895_p7 }
 0x2b2   : > { %p902_p13 = por %p901_p12, %p900_p11 }
 0x2b4   : > { %p903_p0 = pnand %p902_p13, %p896_p8 }
 0x2b6   : > { %906 = shalt.err (!%p903_p0)
}
 0x2b7   : > { %837 = dma.vmem_to_hbm [thread:$0]  (%p1045_p5), %s1127_s25, 128, %s1125_s12, %s676_s13  }
 0x2b8 PF: > { %p843_p1 = scmp.ge.s32.totalorder %s941_s20, 2  ;;  %s701_s0 = sand.u32 1, %s929_s17  }
 0x2b9   : > { %s702_s16 = scalar_lea.sflag [#allocation3], %s701_s0 }
 0x2ba   : > { %p840_p2 = pnand %p843_p1, %p1049_p6 }
 0x2bc   : > { %924 = dma.done.wait (!%p840_p2), %s702_s16, 128  }
 0x2bd   : > { %926 = vsyncadd (!%p840_p2), %s702_s16, 4294967168  ;;  %p21_p3 = scmp.ge.s32.totalorder %s1032_s23, 4   ;;  %s1183_s17 = smov %s933_s18 }
 0x2be   : > { %s1184_s18 = smov %s937_s19  ;;  %s1185_s19 = smov %s1043_s26 }
 0x2bf   : > { %s1186_s20 = smov %s1032_s23  ;;  %23 = sbr.rel (!%p21_p3) target bundleno = 5 (0x5), region = 99 }
 0x2c6   :  { %707 = vsyncpa [#allocation3], 1 }
 0x2c7   :  { %709 = vsyncpa [#allocation3 + $0x1], 1 }

</bundles_post_ra>
